<compile_context>
chip_gen: v7x
topology: tpu7x:2x2x1
jax: 0.10.0
libtpu: 0.0.40
codegen_flags: <defaults>
</compile_context>

<pallas_src>
import jax
import jax.numpy as jnp
from jax.experimental import pallas as pl
from jax.experimental.pallas import tpu as pltpu


def _attention_kernel(x_ref, w_ref, b_ref, o_ref):
    # x_ref / o_ref: (Nb, C, tL)   w_ref: (C, C) in x.dtype   b_ref: (C, 1) f32
    w = w_ref[...]
    b = b_ref[...]
    # Nb is a small compile-time constant -> unrolled; each row is a plain
    # (C, C) @ (C, tL) MXU matmul (no batched dot_general, no transposes).
    for i in range(x_ref.shape[0]):
        x = x_ref[i]                                   # (C, tL): C sublanes, L lanes
        logits = jnp.dot(w, x, preferred_element_type=jnp.float32) + b
        gate = jax.nn.sigmoid(logits)                  # EUP transcendental, f32
        # Gate multiply in the I/O dtype (sigmoid output is in [0, 1], so a
        # low-precision gate loses nothing meaningful); avoids keeping a
        # second f32 copy of the x tile alive.
        o_ref[i] = (x * gate.astype(x.dtype)).astype(o_ref.dtype)


def _vmem_budget_and_limit():
    """Generation-aware VMEM sizing (v5e/v6e: 128 MiB, v7x: 64 MiB physical)."""
    try:
        cap = int(pltpu.get_tpu_info().vmem_capacity_bytes)
    except Exception:
        cap = 64 << 20  # conservative (v7x-sized) fallback
    budget = int(cap * 0.55)   # working-set budget used for tile picking
    limit = int(cap * 0.75)    # scoped-VMEM limit handed to the compiler
    return budget, limit


def _pick_tiles(N, C, L, itemsize, w_itemsize, budget):
    """Pick (Nb, tL) so per-step DMA payload is large (>=1 MiB when possible)
    while the double-buffered working set stays inside `budget`."""

    def need(nb, tl):
        io = 4 * nb * C * tl * itemsize            # 2x-buffered in + out tiles
        tmp = 2 * nb * C * tl * 4                  # f32 logits / gate temporaries
        wgt = 4 * C * C * w_itemsize + 4 * C * 4   # 2x-buffered W + bias
        return io + tmp + wgt + 4096

    # Largest lane-dense L tile (multiple of 128, or full L) that fits.
    if L <= 128:
        tl = L
    else:
        tl = 128  # safe fallback; never request a tile we cannot fit
        for cand in (32768, 16384, 8192, 4096, 2048, 1024, 512, 256, 128):
            if cand <= L and need(1, cand) <= budget:
                tl = cand
                break
    # TODO(synk): for very large C even a 128-lane tile may exceed the scoped
    # VMEM budget; that regime would additionally need tiling of W's output
    # channels (not implemented here).

    # Block several batch rows per step until payload is ~1 MiB per step.
    nb = 1
    target_payload = 1 << 20
    while (nb < N and nb < 8
           and 2 * nb * C * tl * itemsize < target_payload
           and need(2 * nb, tl) <= budget):
        nb *= 2
    nb = min(nb, N)

    # Keep at least 2 grid steps when the problem allows it (pipelining and
    # megacore sharding both need >1 step).
    while nb > 1 and pl.cdiv(N, nb) * pl.cdiv(L, tl) < 2:
        nb //= 2
    while tl > 128 and pl.cdiv(N, nb) * pl.cdiv(L, tl) < 2:
        tl //= 2
    return nb, tl


def attention_block(x, w, b, *, nb=None, tl=None):
    """x: (N, C, L); w: (C, C) conv weight (k=1 squeezed); b: (C,). Returns (N, C, L)."""
    N, C, L = x.shape
    itemsize = jnp.dtype(x.dtype).itemsize

    # Native-dtype matmul operands; accumulation stays f32 in the kernel.
    w_io = w.astype(x.dtype)
    b2 = b.reshape(C, 1).astype(jnp.float32)
    w_itemsize = jnp.dtype(w_io.dtype).itemsize

    budget, vmem_limit = _vmem_budget_and_limit()
    auto_nb, auto_tl = _pick_tiles(N, C, L, itemsize, w_itemsize, budget)
    if nb is None:
        nb = auto_nb
    if tl is None:
        tl = auto_tl
    grid = (pl.cdiv(N, nb), pl.cdiv(L, tl))

    cost = pl.CostEstimate(
        flops=2 * N * L * C * C,
        transcendentals=N * C * L,
        bytes_accessed=2 * N * C * L * itemsize + C * C * w_itemsize + C * 4,
    )

    return pl.pallas_call(
        _attention_kernel,
        out_shape=jax.ShapeDtypeStruct((N, C, L), x.dtype),
        grid_spec=pltpu.PrefetchScalarGridSpec(
            num_scalar_prefetch=0,
            grid=grid,
            in_specs=[
                pl.BlockSpec((nb, C, tl), lambda n, l: (n, 0, l)),  # x tile
                pl.BlockSpec((C, C), lambda n, l: (0, 0)),          # weight, resident
                pl.BlockSpec((C, 1), lambda n, l: (0, 0)),          # bias, resident
            ],
            out_specs=pl.BlockSpec((nb, C, tl), lambda n, l: (n, 0, l)),
        ),
        compiler_params=pltpu.CompilerParams(
            dimension_semantics=("parallel", "parallel"),
            vmem_limit_bytes=vmem_limit,
        ),
        cost_estimate=cost,
    )(x, w_io, b2)


if __name__ == "__main__":
    key = jax.random.PRNGKey(0)
    k_x, k_w, k_b = jax.random.split(key, 3)

    # Small shapes consistent with Conv1d input (N, C, L); L >= 128 so the
    # lane-dense tiling path is exercised.
    N, C, L = 2, 8, 256

    x = jax.random.normal(k_x, (N, C, L), dtype=jnp.float32)

    # Deterministic parameter init mimicking nn.Conv1d(C, C, kernel_size=1)
    # (kaiming-uniform-ish bounds; synthetic weights, not a checkpoint load).
    fan_in = C  # kernel_size = 1
    bound = 1.0 / (fan_in ** 0.5)
    w = jax.random.uniform(k_w, (C, C), minval=-bound, maxval=bound,
                           dtype=jnp.float32)
    b = jax.random.uniform(k_b, (C,), minval=-bound, maxval=bound,
                           dtype=jnp.float32)

    out = attention_block(x, w, b)
    out = jax.block_until_ready(out)

    # Pure-JAX reference of the PyTorch forward pass.
    logits_ref = jnp.einsum("oc,ncl->nol", w, x) + b[None, :, None]
    ref = x * jax.nn.sigmoid(logits_ref)

    assert out.shape == x.shape == (N, C, L)
    assert jnp.allclose(out, ref, atol=1e-5, rtol=1e-5), "mismatch vs reference"

    print("KERNEL_OK")
</pallas_src>

<mosaic_0001>
module attributes {stable_mosaic.version = 11 : i64} {
  func.func @_attention_kernel(%arg0: i32, %arg1: i32, %arg2: memref<1x8x256xf32, #tpu.memory_space<vmem>>, %arg3: memref<8x8xf32, #tpu.memory_space<vmem>>, %arg4: memref<8x1xf32, #tpu.memory_space<vmem>>, %arg5: memref<1x8x256xf32, #tpu.memory_space<vmem>>) attributes {dimension_semantics = [#tpu.dimension_semantics<parallel>, #tpu.dimension_semantics<parallel>], iteration_bounds = array<i64: 2, 1>, scalar_prefetch = 0 : i64, scratch_operands = 0 : i64, tpu.core_type = #tpu.core_type<tc>, window_params = [{transform_indices = @transform_0, window_bounds = array<i64: 1, 8, 256>}, {pipeline_mode = #tpu.pipeline_mode<synchronous>, transform_indices = @transform_1, window_bounds = array<i64: 8, 8>}, {pipeline_mode = #tpu.pipeline_mode<synchronous>, transform_indices = @transform_2, window_bounds = array<i64: 8, 1>}, {transform_indices = @transform_3, window_bounds = array<i64: 1, 8, 256>}]} {
    %c0 = arith.constant 0 : index
    %c0_0 = arith.constant 0 : index
    %0 = vector.load %arg3[%c0, %c0_0] : memref<8x8xf32, #tpu.memory_space<vmem>>, vector<8x8xf32>
    %c0_1 = arith.constant 0 : index
    %c0_2 = arith.constant 0 : index
    %1 = vector.load %arg4[%c0_1, %c0_2] : memref<8x1xf32, #tpu.memory_space<vmem>>, vector<8x1xf32>
    %c0_3 = arith.constant 0 : index
    %c0_4 = arith.constant 0 : index
    %c0_5 = arith.constant 0 : index
    %2 = vector.load %arg2[%c0_3, %c0_4, %c0_5] : memref<1x8x256xf32, #tpu.memory_space<vmem>>, vector<1x8x256xf32>
    %3 = vector.shape_cast %2 : vector<1x8x256xf32> to vector<8x256xf32>
    %cst = arith.constant dense<0.000000e+00> : vector<8x256xf32>
    %4 = tpu.matmul %0, %3, %cst {dimension_numbers = #tpu.dot_dimension_numbers<[1], [0], [0], [1], [0, 0, 1, 1], [], []>} : vector<8x8xf32>, vector<8x256xf32>, vector<8x256xf32> -> vector<8x256xf32>
    %5 = vector.broadcast %1 : vector<8x1xf32> to vector<8x256xf32>
    %6 = arith.addf %4, %5 : vector<8x256xf32>
    %7 = arith.negf %6 : vector<8x256xf32>
    %8 = math.exp %7 : vector<8x256xf32>
    %cst_6 = arith.constant 1.000000e+00 : f32
    %9 = vector.broadcast %cst_6 : f32 to vector<8x256xf32>
    %10 = arith.addf %9, %8 : vector<8x256xf32>
    %11 = arith.divf %9, %10 : vector<8x256xf32>
    %12 = arith.mulf %3, %11 : vector<8x256xf32>
    %c0_7 = arith.constant 0 : index
    %c0_8 = arith.constant 0 : index
    %c0_9 = arith.constant 0 : index
    %13 = vector.load %arg5[%c0_7, %c0_8, %c0_9] : memref<1x8x256xf32, #tpu.memory_space<vmem>>, vector<1x8x256xf32>
    %14 = vector.shape_cast %13 : vector<1x8x256xf32> to vector<8x256xf32>
    %15 = vector.shape_cast %12 : vector<8x256xf32> to vector<1x8x256xf32>
    tpu.vector_store %arg5[%c0_7, %c0_8, %c0_9], %15 {strides = array<i32>} : memref<1x8x256xf32, #tpu.memory_space<vmem>>, vector<1x8x256xf32>,
    return
  }
  func.func @transform_0(%arg0: i32, %arg1: i32) -> (i32, i32, i32) {
    %c0_i32 = arith.constant 0 : i32
    %c0_i32_0 = arith.constant 0 : i32
    return %arg0, %c0_i32, %arg1 : i32, i32, i32
  }
  func.func @transform_1(%arg0: i32, %arg1: i32) -> (i32, i32) {
    %c0_i32 = arith.constant 0 : i32
    %c0_i32_0 = arith.constant 0 : i32
    %c0_i32_1 = arith.constant 0 : i32
    return %c0_i32, %c0_i32_0 : i32, i32
  }
  func.func @transform_2(%arg0: i32, %arg1: i32) -> (i32, i32) {
    %c0_i32 = arith.constant 0 : i32
    %c0_i32_0 = arith.constant 0 : i32
    %c0_i32_1 = arith.constant 0 : i32
    return %c0_i32, %c0_i32_0 : i32, i32
  }
  func.func @transform_3(%arg0: i32, %arg1: i32) -> (i32, i32, i32) {
    %c0_i32 = arith.constant 0 : i32
    %c0_i32_0 = arith.constant 0 : i32
    return %arg0, %c0_i32, %arg1 : i32, i32, i32
  }
}

</mosaic_0001>

<bundles_post_ra>
// kernel: tpu_custom_call.1
= control target key start
LH: loop header
LB: loop body
LE: loop exit
PB: predicated region body
PF: predicated region fallthrough
CT: control target
= control target key end

     0   :  { %8 = vsyncpa [#allocation3], 0  ;;  %s821_s0 = inlined_call_operand.hbm [shape: f32[2,8,256], index: 0, kind: input, shape index: {}]   ;;  %s822_s1 = inlined_call_operand.vmem [shape: f32[8,8], index: 1, kind: input, shape index: {}]   ;;  %s823_s2 = inlined_call_operand.vmem [shape: f32[8,1], index: 2, kind: input, shape index: {}]   ;;  %s824_s3 = inlined_call_operand.hbm [shape: f32[2,8,256], index: 3, kind: output, shape index: {}]  }
   0x1   :  { %10 = vsyncpa [#allocation3 + $0x1], 0 }
   0x2   :  { %11 = vsyncpa [#allocation4], 0 }
   0x3   :  { %13 = vsyncpa [#allocation4 + $0x1], 0  ;;  %s639_s12 = smov 0   ;;  %s641_s13 = smov 0  }
   0x4   :  { %s643_s14 = smov 0   ;;  %s645_s15 = smov 0  }
   0x5   :  { %s647_s16 = smov 0   ;;  %s649_s17 = smov 0  }
   0x6 LB: > { %s408_s18 = sadd.s32 4294967295, %s613_s17   ;;  %s409_s19 = sadd.s32 4294967294, %s613_s17   ;;  %s613_s17 = sphi %s649_s17, %s19_s17   ;;  %s609_s16 = sphi %s647_s16, %s840_s16   ;;  %s605_s15 = sphi %s645_s15, %s839_s15   ;;  %s601_s14 = sphi %s643_s14, %s838_s14   ;;  %s597_s13 = sphi %s641_s13, %s837_s13   ;;  %s593_s12 = sphi %s639_s12, %s836_s12  }
   0x7   : > { %s31_s20 = sadd.s32 1, %s609_s16  ;;  %s40_s21 = sadd.s32 1, %s601_s14 }
   0x8   : > { %p33_p0 = scmp.ge.s32.totalorder %s31_s20, 2  ;;  %p47_p1 = scmp.ne.s32.totalorder %s601_s14, %s597_s13 }
   0x9   : > { %p48_p2 = scmp.eq.s32.totalorder %s613_s17, 0  ;;  %p53_p3 = scmp.ne.s32.totalorder %s597_s13, %s593_s12 }
   0xa   : > { %s842_s20 = smov (%p33_p0, %s31_s20), 0  ;;  %p54_p5 = scmp.eq.s32.totalorder %s408_s18, 0 }
   0xb   : > { %p680_p4 = por %p48_p2, %p47_p1  ;;  %s35_s23 = ssub.s32 %s609_s16, %s842_s20 }
   0xc   : > { %p121_p6 = scmp.eq.s32.totalorder %s408_s18, 1  ;;  %p38_p7 = scmp.eq.s32.totalorder %s35_s23, 0 }
   0xd   : > { %p686_p8 = por %p54_p5, %p53_p3  ;;  %p127_p10 = scmp.eq.s32.totalorder %s409_s19, 1 }
   0xe   : > { %p690_p9 = por %p121_p6, %p47_p1  ;;  %p440_p13 = scmp.lt.s32.totalorder %s613_s17, 2 }
   0xf   : > { %s695_s26 = scalar_select %p38_p7, %s601_s14, %s40_s21  }
  0x10   : > { %s828_s25 = scalar_select %p690_p9, 1, 0 }
  0x11   : > { %p697_p11 = por %p127_p10, %p53_p3  ;;  %s153_s28 = sand.u32 1, %s601_s14  }
  0x12   : > { %s412_s29 = sshll.u32 %s153_s28, 4  ;;  %s426_s30 = sshll.u32 %s609_s16, 8 }
  0x13   : > { %s829_s27 = scalar_select %p697_p11, 1, 0 }
  0x14   : > { %s708_s6 = scalar_lea.hbm %s821_s0, %s426_s30  ;;  %s157_s7 = scalar_lea.vmem [#allocation2], %s412_s29 }
  0x15   : > { %s167_s8 = sshll.u32 %s157_s7, 4  ;;  %p714_p0 = pnand %p440_p13, %p680_p4  ;;  %s710_s8 = int_to_ptr.vmem [resolvable:$true] %s167_s8 }
  0x16   : > { %s154_s10 = scalar_lea.sflag [#allocation3], %s153_s28  ;;  %s501_s11 = scalar_lea.hbm %s708_s6, 256 }
  0x17   : > { %p502_p3 = scmp.ne.s32.totalorder %s708_s6, %s501_s11  ;;  %p503_p5 = pneg %p714_p0 }
  0x18   : > { %s506_s21 = scalar_lea.hbm %s821_s0, 512  ;;  %p507_p4 = scmp.lt.u32.totalorder %s708_s6, %s821_s0 }
  0x19   : > { %p504_p6 = pnand %p503_p5, %p502_p3  ;;  %p508_p10 = scmp.lt.u32.totalorder %s506_s21, %s501_s11 }
  0x1a   : > { %p510_p12 = scmp.lt.u32.totalorder %s501_s11, %s708_s6 }
  0x1b   : > { %p505_p7 = pneg %p504_p6  ;;  %p509_p13 = por %p508_p10, %p507_p4 }
  0x1d   : > { %p511_p1 = por %p510_p12, %p509_p13 }
  0x1f   : > { %p512_p2 = pnand %p511_p1, %p505_p7 }
  0x21   : > { %515 = shalt.err (!%p512_p2)
}
  0x22   : > { %s516_s28 = scalar_lea.vmem %s710_s8, 256  ;;  %s615_s29 = smov [#allocation2]  }
  0x23   : > { %p517_p3 = scmp.ne.s32.totalorder %s710_s8, %s516_s28  ;;  %s521_s30 = sshll.u32 %s615_s29, 4  ;;  %s522_s30 = int_to_ptr.vmem [resolvable:$false] %s521_s30 }
  0x24   : > { %s523_s4 = scalar_lea.vmem %s522_s30, 512  ;;  %p524_p9 = scmp.lt.s32.totalorder %s710_s8, %s522_s30 }
  0x25   : > { %p519_p6 = pnand %p517_p3, %p503_p5  ;;  %p525_p4 = scmp.lt.s32.totalorder %s523_s4, %s516_s28 }
  0x27   : > { %p520_p11 = pneg %p519_p6  ;;  %p526_p10 = por %p525_p4, %p524_p9 }
  0x29   : > { %p527_p12 = pnand %p526_p10, %p520_p11 }
  0x2b   : > { %530 = shalt.err (!%p527_p12)
}
  0x2c   : > { %435 = dma.hbm_to_vmem [thread:$0]  (!%p714_p0), %s708_s6, 256, %s710_s8, %s154_s10  }
  0x2d   : > { %p831_p1 = scmp.lt.s32.totalorder %s613_s17, 3  ;;  %p832_p2 = scmp.ge.s32.totalorder %s613_s17, 1 }
  0x2f   : > { %p173_p5 = pnand %p832_p2, %p831_p1 }
  0x30   : > { %s750_s5 = sand.u32 (!%p173_p5), 1, %s597_s13  }
  0x31   : > { %176 = sbr.rel (%p173_p5) target bundleno = 318 (0x13e), region = 32  ;;  %s416_s7 = sshll.u32 (!%p173_p5), %s750_s5, 4 }
  0x32   : > { %s179_s11 = scalar_lea.sflag (!%p173_p5), [#allocation3], %s750_s5  ;;  %s182_s9 = scalar_lea.vmem (!%p173_p5), [#allocation2], %s416_s7 }
  0x38   : > { %584 = dma.done.wait (%p686_p8), %s179_s11, 256  }
  0x39   : > { %586 = vsyncadd (%p686_p8), %s179_s11, 4294967040  ;;  %v616_v0 = vmov 0.0   ;;  %v617_v1 = vmov 0   ;;  %v210_v2 = vld [vmem:[%s182_s9 + $0x8] sm:$0xff]  ;;  %v209_v3 = vld [vmem:[%s182_s9] sm:$0xff]  ;;  %vm216_vm0 = vcmask 64512  }
  0x3a   : > { %284 = vmatprep.mubr.f32.mxu0 %v616_v0  ;;  %492 = vset.pattern.permute.xlu0 %v617_v1  ;;  %v207_v4 = vld [vmem:[%s822_s1] sm:$0xff]  ;;  %s427_s24 = sshll.u32 %s605_s15, 8  ;;  %s204_s19 = scalar_lea.vmem [#allocation5], %s416_s7 }
  0x3b   : > { %220 = vmatprep.subr.mxu0 %v210_v2  ;;  %v208_v5 = vld [vmem:[%s823_s2] sm:$0xff]  ;;  %s324_s21 = sshll.u32 %s204_s19, 4  ;;  %s772_s28 = scalar_lea.hbm %s824_s3, %s427_s24  ;;  %s774_s21 = int_to_ptr.vmem [resolvable:$true] %s324_s21 }
  0x3c   : > { %221 = vmatpush1.msra.mxu0 %v209_v3  ;;  %213 = vperm.xlu0 %492, %v208_v5   ;;  %s308_s15 = scalar_lea.sflag [#allocation4], %s750_s5  ;;  %s531_s29 = scalar_lea.vmem %s774_s21, 256 }
  0x3d   : > { %418 = vmatmul.mubr.msk.f32.vlgmr.msra.gmra.mrb[0].mxu0 %vm216_vm0, %v207_v4  ;;  %p532_p8 = scmp.ne.s32.totalorder %s774_s21, %s531_s29  ;;  %p833_p9 = scmp.ne.s32.totalorder %s828_s25, 0 }
  0x3e   : > { %s618_s30 = smov [#allocation5]  }
  0x3f   : > { %p533_p11 = pnand %p532_p8, %p833_p9  ;;  %s535_s4 = sshll.u32 %s618_s30, 4  ;;  %s536_s4 = int_to_ptr.vmem [resolvable:$false] %s535_s4 }
  0x40   : > { %s537_s7 = scalar_lea.vmem %s536_s4, 512  ;;  %p538_p7 = scmp.lt.s32.totalorder %s774_s21, %s536_s4 }
  0x41   : > { %p534_p0 = pneg %p533_p11  ;;  %p539_p13 = scmp.lt.s32.totalorder %s537_s7, %s531_s29 }
  0x43   : > { %p540_p3 = por %p539_p13, %p538_p7 }
  0x45   : > { %p541_p6 = pnand %p540_p3, %p534_p0 }
  0xbb   : > { %v214_v6 = vpop.permute.xlu0 %213 }
 0x110   : > { %v286_v7 = vpop.f32.mrb[0].mxu0 }
 0x111   : > { %v287_v8 = vadd.f32 %v286_v7, %v214_v6  ;;  %v288_v9 = vpop.f32.mrb[1].mxu0 }
 0x112   : > { %v289_v10 = vadd.f32 %v288_v9, %v214_v6 }
 0x113   : > { %v419_v11 = vmul.f32 -1.442695, %v287_v8 }
 0x114   : > { %v420_v12 = vmul.f32 -1.442695, %v289_v10 }
 0x115   : > { %493 = vpow2.f32 %v419_v11 }
 0x116   : > { %495 = vpow2.f32 %v420_v12 }
 0x11f   : > { %v494_v13 = vpop.eup %493 }
 0x120   : > { %v496_v14 = vpop.eup %495  ;;  %v297_v15 = vadd.f32 1.0, %v494_v13 }
 0x121   : > { %v298_v16 = vadd.f32 1.0, %v496_v14 }
 0x122   : > { %497 = vrcp.f32 %v297_v15 }
 0x123   : > { %499 = vrcp.f32 %v298_v16 }
 0x12c   : > { %v498_v17 = vpop.eup %497 }
 0x12d   : > { %v500_v18 = vpop.eup %499  ;;  %v303_v19 = vmul.f32 %v498_v17, %v209_v3 }
 0x12e   : > { %v304_v20 = vmul.f32 %v500_v18, %v210_v2 }
 0x12f   : > { %305 = vst [vmem:[%s204_s19] sm:$0xff] %v303_v19 }
 0x130   : > { %306 = vst [vmem:[%s204_s19 + $0x8] sm:$0xff] %v304_v20 }
 0x131   : > { %544 = shalt.err (!%p541_p6)
}
 0x132   : > { %s545_s5 = scalar_lea.hbm %s772_s28, 256  ;;  %s549_s6 = scalar_lea.hbm %s824_s3, 512 }
 0x133   : > { %p546_p4 = scmp.ne.s32.totalorder %s772_s28, %s545_s5  ;;  %p550_p1 = scmp.lt.u32.totalorder %s772_s28, %s824_s3 }
 0x134   : > { %p551_p2 = scmp.lt.u32.totalorder %s549_s6, %s545_s5  ;;  %p553_p8 = scmp.lt.u32.totalorder %s545_s5, %s772_s28 }
 0x135   : > { %p547_p10 = pnand %p546_p4, %p833_p9 }
 0x136   : > { %p552_p5 = por %p551_p2, %p550_p1 }
 0x137   : > { %p548_p12 = pneg %p547_p10 }
 0x138   : > { %p554_p11 = por %p553_p8, %p552_p5 }
 0x13a   : > { %p555_p0 = pnand %p554_p11, %p548_p12 }
 0x13c   : > { %558 = shalt.err (!%p555_p0)
}
 0x13d   : > { %430 = dma.vmem_to_hbm [thread:$0]  (%p833_p9), %s774_s21, 256, %s772_s28, %s308_s15  }
 0x13e PF: > { %s336_s18 = sand.u32 1, %s593_s12   ;;  %p834_p7 = scmp.ne.s32.totalorder %s829_s27, 0 }
 0x13f   : > { %p835_p13 = scmp.ge.s32.totalorder %s613_s17, 2  ;;  %s337_s24 = scalar_lea.sflag [#allocation4], %s336_s18 }
 0x141   : > { %p437_p3 = pnand %p835_p13, %p834_p7 }
 0x143   : > { %588 = dma.done.wait (!%p437_p3), %s337_s24, 256  }
 0x144   : > { %590 = vsyncadd (!%p437_p3), %s337_s24, 4294967040  ;;  %s19_s17 = sadd.s32 1, %s613_s17   ;;  %s836_s12 = smov %s597_s13 }
 0x145   : > { %p16_p6 = scmp.ge.s32.totalorder %s19_s17, 4   ;;  %s837_s13 = smov %s601_s14 }
 0x146   : > { %s838_s14 = smov %s695_s26  ;;  %s839_s15 = smov %s609_s16 }
 0x147   : > { %s840_s16 = smov %s842_s20  ;;  %18 = sbr.rel (!%p16_p6) target bundleno = 6 (0x6), region = 77 }
 0x14e   :  { %342 = vsyncpa [#allocation3], 1 }
 0x14f   :  { %344 = vsyncpa [#allocation3 + $0x1], 1 }
 0x150   :  { %345 = vsyncpa [#allocation4], 1 }
 0x151   :  { %347 = vsyncpa [#allocation4 + $0x1], 1 }

</bundles_post_ra>
